<compile_context>
chip_gen: v6e
topology: v6e:2x2x1
jax: 0.10.0
libtpu: 0.0.40
codegen_flags: <defaults>
</compile_context>

<pallas_src>
import numpy as np
import jax
import jax.numpy as jnp
from jax import lax
from jax.experimental import pallas as pl
from jax.experimental.pallas import tpu as pltpu


# ----------------------------------------------------------------------------
# g_filter: deterministic scipy.ndimage.gaussian_filter equivalent (pure numpy
# glue -- this is the constructor-injected `g_filter` of the module).
# ----------------------------------------------------------------------------
def _gaussian_kernel1d(sigma, radius):
    x = np.arange(-radius, radius + 1, dtype=np.float64)
    phi = np.exp(-0.5 * (x / sigma) ** 2)
    return phi / phi.sum()


def gaussian_filter_np(a, sigma, truncate=4.0):
    radius = int(truncate * float(sigma) + 0.5)
    w = _gaussian_kernel1d(sigma, radius)
    out = np.asarray(a, dtype=np.float64)
    for axis in range(out.ndim):
        out = np.apply_along_axis(
            lambda m: np.convolve(np.pad(m, radius, mode="symmetric"), w, mode="valid"),
            axis,
            out,
        )
    return out


# ----------------------------------------------------------------------------
# Banded cross-correlation matrices (zero padding baked in).
#   out[i] = sum_t w1[t] * x[i + t - pad]   (OOB taps contribute 0)
#   ==> out = x_rowvec @ M  with  M[j, i] = w1[j - i + pad]
# ----------------------------------------------------------------------------
def _banded_corr_matrix(length, w1, pad):
    k = w1.shape[0]
    j = np.arange(length)[:, None]
    i = np.arange(length)[None, :]
    t = j - i + pad
    valid = (t >= 0) & (t < k)
    m = np.zeros((length, length), dtype=np.float64)
    m[valid] = w1[t[valid]]
    return m


# ----------------------------------------------------------------------------
# Pallas kernel: separable 3-D cross-correlation as two MXU matmuls.
# ----------------------------------------------------------------------------
def _gauss_sep_kernel(mdt_ref, mhw_ref, x_ref, o_ref):
    # mdt_ref: (tD, D)   rows of M_D^T for this output-D tile
    # mhw_ref: (HW, HW)  kron(M_H, M_W)
    # x_ref  : (D, HW)   full-D slab of one batch element (lane-dense last dim)
    # o_ref  : (tD, HW)
    x = x_ref[...].astype(jnp.float32)
    y = jnp.dot(mdt_ref[...], x, preferred_element_type=jnp.float32)    # D pass
    z = jnp.dot(y, mhw_ref[...], preferred_element_type=jnp.float32)    # H & W pass
    o_ref[...] = z.astype(o_ref.dtype)


def gaussian_filter_conv3d(x, w1):
    """x: (N, 1, D, H, W); w1: numpy (k,) separable 1-D factor of the conv weight."""
    N, C, D, H, W = x.shape
    assert C == 1, "GaussianFilter uses a single-channel Conv3d"
    w1 = np.asarray(w1, dtype=np.float64)
    k = w1.shape[0]
    pad = (k - 1) // 2
    HW = H * W

    # Banded weight matrices (host glue): padding folded in, no SMEM scalars.
    m_d = _banded_corr_matrix(D, w1, pad)
    m_h = _banded_corr_matrix(H, w1, pad)
    m_w = _banded_corr_matrix(W, w1, pad)
    mdt = jnp.asarray(m_d.T, dtype=jnp.float32)                 # (D, D)
    mhw = jnp.asarray(np.kron(m_h, m_w), dtype=jnp.float32)     # (HW, HW)

    # Lane-dense 2-D view of the volume: channel dim dropped, H and W fused.
    x2 = x.reshape(N, D, HW)

    # Output-D tile: default to the FULL D (fewest grid steps -> lowest
    # per-step overhead on single-TC chips; the batch axis already feeds both
    # v7x TensorCores).  Only split D when the live output tile gets big.
    tD = D
    while tD % 16 == 0 and tD * HW * 4 > (2 << 20):   # cap ~2 MiB per out tile
        tD //= 2
    n_dt = D // tD

    flops = 2 * N * (D * D * HW + D * HW * HW)
    bytes_accessed = 4 * (N * D * HW * 2 + D * D + HW * HW)

    out2 = pl.pallas_call(
        _gauss_sep_kernel,
        out_shape=jax.ShapeDtypeStruct((N, D, HW), x.dtype),
        grid=(N, n_dt),
        in_specs=[
            pl.BlockSpec((tD, D), lambda n, j: (j, 0)),           # M_D^T rows for tile j
            pl.BlockSpec((HW, HW), lambda n, j: (0, 0)),          # kron(M_H, M_W), resident
            pl.BlockSpec((None, D, HW), lambda n, j: (n, 0, 0)),  # full-D slab of batch n
        ],
        out_specs=pl.BlockSpec((None, tD, HW), lambda n, j: (n, j, 0)),
        compiler_params=pltpu.CompilerParams(
            dimension_semantics=("parallel", "parallel")),
        cost_estimate=pl.CostEstimate(
            flops=flops, transcendentals=0, bytes_accessed=bytes_accessed),
    )(mdt, mhw, x2)

    return out2.reshape(N, 1, D, H, W)  # back to NCDHW


# ----------------------------------------------------------------------------
# Driver
# ----------------------------------------------------------------------------
if __name__ == "__main__":
    k_size = 5
    sigma = 1.0
    pad = (k_size - 1) // 2

    # Build the conv weight exactly as the module's forward does:
    # impulse at [k//2 + 1]*3 (off-centre, as written in the module), smoothed
    # by g_filter(sigma).
    n3 = np.zeros((k_size, k_size, k_size))
    n3[k_size // 2 + 1, k_size // 2 + 1, k_size // 2 + 1] = 1.0
    w3d = gaussian_filter_np(n3, sigma=sigma)                    # (k, k, k)

    # Its exact separable 1-D factor (same construction applied to a 1-D delta).
    n1 = np.zeros((k_size,))
    n1[k_size // 2 + 1] = 1.0
    w1 = gaussian_filter_np(n1, sigma=sigma)                     # (k,)
    assert np.allclose(np.einsum("i,j,k->ijk", w1, w1, w1), w3d, atol=1e-12)

    key = jax.random.PRNGKey(0)
    x = jax.random.normal(key, (2, 1, 16, 16, 16), dtype=jnp.float32)

    out = gaussian_filter_conv3d(x, w1)
    out = jax.block_until_ready(out)

    # Reference: XLA conv with the module's full 3-D weight (cross-correlation,
    # zero padding == PyTorch Conv3d(padding=pad, bias=None)).
    weight = jnp.asarray(w3d[None, None], dtype=jnp.float32)
    ref = lax.conv_general_dilated(
        x, weight,
        window_strides=(1, 1, 1),
        padding=[(pad, pad)] * 3,
        dimension_numbers=("NCDHW", "OIDHW", "NCDHW"),
        precision=lax.Precision.HIGHEST,
    )

    assert out.shape == x.shape
    np.testing.assert_allclose(np.asarray(out), np.asarray(ref), rtol=1e-3, atol=1e-4)
    print("KERNEL_OK")
</pallas_src>

<mosaic_0001>
module attributes {stable_mosaic.version = 11 : i64} {
  func.func @_gauss_sep_kernel(%arg0: i32, %arg1: i32, %arg2: memref<16x16xf32, #tpu.memory_space<vmem>>, %arg3: memref<256x256xf32, #tpu.memory_space<vmem>>, %arg4: memref<1x16x256xf32, #tpu.memory_space<vmem>>, %arg5: memref<1x16x256xf32, #tpu.memory_space<vmem>>) attributes {dimension_semantics = [#tpu.dimension_semantics<parallel>, #tpu.dimension_semantics<parallel>], iteration_bounds = array<i64: 2, 1>, scalar_prefetch = 0 : i64, scratch_operands = 0 : i64, tpu.core_type = #tpu.core_type<tc>, window_params = [{transform_indices = @transform_0, window_bounds = array<i64: 16, 16>}, {pipeline_mode = #tpu.pipeline_mode<synchronous>, transform_indices = @transform_1, window_bounds = array<i64: 256, 256>}, {transform_indices = @transform_2, window_bounds = array<i64: 1, 16, 256>}, {transform_indices = @transform_3, window_bounds = array<i64: 1, 16, 256>}]} {
    %c0 = arith.constant 0 : index
    %c0_0 = arith.constant 0 : index
    %c0_1 = arith.constant 0 : index
    %0 = vector.load %arg4[%c0, %c0_0, %c0_1] : memref<1x16x256xf32, #tpu.memory_space<vmem>>, vector<1x16x256xf32>
    %1 = vector.shape_cast %0 : vector<1x16x256xf32> to vector<16x256xf32>
    %c0_2 = arith.constant 0 : index
    %c0_3 = arith.constant 0 : index
    %2 = vector.load %arg2[%c0_2, %c0_3] : memref<16x16xf32, #tpu.memory_space<vmem>>, vector<16x16xf32>
    %cst = arith.constant dense<0.000000e+00> : vector<16x256xf32>
    %3 = tpu.matmul %2, %1, %cst {dimension_numbers = #tpu.dot_dimension_numbers<[1], [0], [0], [1], [0, 0, 1, 1], [], []>} : vector<16x16xf32>, vector<16x256xf32>, vector<16x256xf32> -> vector<16x256xf32>
    %c0_4 = arith.constant 0 : index
    %c0_5 = arith.constant 0 : index
    %4 = vector.load %arg3[%c0_4, %c0_5] : memref<256x256xf32, #tpu.memory_space<vmem>>, vector<256x256xf32>
    %cst_6 = arith.constant dense<0.000000e+00> : vector<16x256xf32>
    %5 = tpu.matmul %3, %4, %cst_6 {dimension_numbers = #tpu.dot_dimension_numbers<[1], [0], [0], [1], [0, 0, 1, 1], [], []>} : vector<16x256xf32>, vector<256x256xf32>, vector<16x256xf32> -> vector<16x256xf32>
    %c0_7 = arith.constant 0 : index
    %c0_8 = arith.constant 0 : index
    %c0_9 = arith.constant 0 : index
    %6 = vector.load %arg5[%c0_7, %c0_8, %c0_9] : memref<1x16x256xf32, #tpu.memory_space<vmem>>, vector<1x16x256xf32>
    %7 = vector.shape_cast %6 : vector<1x16x256xf32> to vector<16x256xf32>
    %8 = vector.shape_cast %5 : vector<16x256xf32> to vector<1x16x256xf32>
    tpu.vector_store %arg5[%c0_7, %c0_8, %c0_9], %8 {strides = array<i32>} : memref<1x16x256xf32, #tpu.memory_space<vmem>>, vector<1x16x256xf32>,
    return
  }
  func.func @transform_0(%arg0: i32, %arg1: i32) -> (i32, i32) {
    %c0_i32 = arith.constant 0 : i32
    %c0_i32_0 = arith.constant 0 : i32
    return %arg1, %c0_i32 : i32, i32
  }
  func.func @transform_1(%arg0: i32, %arg1: i32) -> (i32, i32) {
    %c0_i32 = arith.constant 0 : i32
    %c0_i32_0 = arith.constant 0 : i32
    %c0_i32_1 = arith.constant 0 : i32
    return %c0_i32, %c0_i32_0 : i32, i32
  }
  func.func @transform_2(%arg0: i32, %arg1: i32) -> (i32, i32, i32) {
    %c0_i32 = arith.constant 0 : i32
    %c0_i32_0 = arith.constant 0 : i32
    %c0_i32_1 = arith.constant 0 : i32
    return %arg0, %c0_i32, %c0_i32_0 : i32, i32, i32
  }
  func.func @transform_3(%arg0: i32, %arg1: i32) -> (i32, i32, i32) {
    %c0_i32 = arith.constant 0 : i32
    %c0_i32_0 = arith.constant 0 : i32
    return %arg0, %arg1, %c0_i32 : i32, i32, i32
  }
}

</mosaic_0001>

<bundles_post_ra>
// kernel: tpu_custom_call.1
= control target key start
LH: loop header
LB: loop body
LE: loop exit
PB: predicated region body
PF: predicated region fallthrough
CT: control target
= control target key end

     0   :  { %s1115_s0 = inlined_call_operand.hbm [shape: f32[16,16], index: 0, kind: input, shape index: {}]   ;;  %s1116_s1 = inlined_call_operand.hbm [shape: f32[256,256], index: 1, kind: input, shape index: {}]   ;;  %s1117_s2 = inlined_call_operand.hbm [shape: f32[2,16,256], index: 2, kind: input, shape index: {}]   ;;  %s1118_s3 = inlined_call_operand.hbm [shape: f32[2,16,256], index: 3, kind: output, shape index: {}]  }
   0x1   :  { %1124 = sst [smem:[#allocation13_spill]] %s1115_s0 }
   0x2   :  { %1125 = sst [smem:[#allocation14_spill]] %s1116_s1 }
   0x3   :  { %8 = vsyncpa [#allocation3], 0 }
   0x4   :  { %9 = vsyncpa [#allocation6], 0 }
   0x5   :  { %10 = vsyncpa [#allocation4], 0 }
   0x6   :  { %12 = vsyncpa [#allocation4 + $0x1], 0  ;;  %s911_s12 = smov 0   ;;  %s913_s13 = smov 0  }
   0x7   :  { %s915_s14 = smov 0   ;;  %s917_s15 = smov 0  }
   0x8   :  { %s919_s16 = smov 0   ;;  %s921_s17 = smov 0  }
   0x9 LB: > { %s942_s18 = sadd.s32 4294967295, %s878_s17   ;;  %s598_s19 = sadd.s32 4294967294, %s878_s17   ;;  %s878_s17 = sphi %s921_s17, %s18_s17   ;;  %s874_s16 = sphi %s919_s16, %s1149_s16   ;;  %s870_s15 = sphi %s917_s15, %s1148_s15   ;;  %s866_s14 = sphi %s915_s14, %s1147_s14   ;;  %s862_s13 = sphi %s913_s13, %s1146_s13   ;;  %s858_s12 = sphi %s911_s12, %s1145_s12  }
   0xa   : > { %p91_p0 = scmp.ne.s32.totalorder %s866_s14, %s862_s13  ;;  %p92_p1 = scmp.eq.s32.totalorder %s878_s17, 0 }
   0xb   : > { %p97_p2 = scmp.ne.s32.totalorder %s862_s13, %s858_s12  ;;  %p1119_p3 = scmp.eq.s32.totalorder %s942_s18, 0 }
   0xc   : > { %p951_p4 = por %p92_p1, %p91_p0  ;;  %p123_p5 = scmp.eq.s32.totalorder %s942_s18, 1 }
   0xd   : > { %p958_p6 = por %p1119_p3, %p97_p2  ;;  %p129_p7 = scmp.eq.s32.totalorder %s598_s19, 1 }
   0xe   : > { %p962_p8 = por %p123_p5, %p91_p0  ;;  %p599_p9 = scmp.ge.s32.totalorder %s878_s17, 1 }
   0xf   : > { %s1127_s21 = scalar_select %p958_p6, 1, 0 }
  0x10   : > { %s1128_s22 = scalar_select %p962_p8, 1, 0 }
  0x11   : > { %p967_p10 = por %p129_p7, %p97_p2  ;;  %p136_p11 = scmp.lt.s32.totalorder %s878_s17, 3 }
  0x12   : > { %s880_s25 = smov [#allocation2]   ;;  %p649_p1 = scmp.lt.s32.totalorder %s878_s17, 2 }
  0x13   : > { %s1129_s23 = scalar_select %p967_p10, 1, 0 }
  0x14   : > { %p972_p12 = pnand %p599_p9, %p136_p11  ;;  %s151_s26 = sshll.u32 %s880_s25, 4  ;;  %s152_s26 = int_to_ptr.vmem [resolvable:$true] %s151_s26 }
  0x15   : > { %p988_p2 = pnand %p649_p1, %p951_p4  ;;  %s881_s29 = smov [#allocation5]  }
  0x16   : > { %p632_p13 = pneg %p972_p12  ;;  %s164_s30 = sshll.u32 %s881_s29, 4  ;;  %s165_s30 = int_to_ptr.vmem [resolvable:$true] %s164_s30 }
  0x17   : > { %s721_s4 = scalar_lea.vmem %s152_s26, 256  ;;  %p729_p0 = scmp.lt.s32.totalorder %s152_s26, %s152_s26 }
  0x18   : > { %p982_p5 = pnand %p632_p13, %p1119_p3  ;;  %p722_p9 = scmp.ne.s32.totalorder %s152_s26, %s721_s4 }
  0x19   : > { %p730_p3 = scmp.lt.s32.totalorder %s721_s4, %s721_s4 }
  0x1a   : > { %p712_p7 = pneg %p982_p5 }
  0x1b   : > { %p731_p10 = por %p730_p3, %p729_p0 }
  0x1c   : > { %p724_p11 = pnand %p722_p9, %p712_p7 }
  0x1e   : > { %p725_p13 = pneg %p724_p11 }
  0x20   : > { %p732_p8 = pnand %p731_p10, %p725_p13 }
  0x22   : > { %735 = shalt.err (!%p732_p8)
}
  0x23   : > { %s882_s5 = smov 128   ;;  %s883_s6 = smov 8  }
  0x24   : > { %s1133_s0 = sld [smem:[#allocation13_spill]]  ;;  %s747_s9 = scalar_lea.vmem %s165_s30, 8192 }
  0x25   : > { %p748_p4 = scmp.ne.s32.totalorder %s165_s30, %s747_s9  ;;  %p755_p11 = scmp.lt.s32.totalorder %s165_s30, %s165_s30 }
  0x26   : > { %p756_p6 = scmp.lt.s32.totalorder %s747_s9, %s747_s9 }
  0x27   : > { %p750_p1 = pnand %p748_p4, %p712_p7 }
  0x28   : > { %p757_p3 = por %p756_p6, %p755_p11 }
  0x29   : > { %p751_p9 = pneg %p750_p1 }
  0x2a   : > { %635 = dma.hbm_to_vmem [thread:$0]  (!%p982_p5), %s1133_s0, 256, %s152_s26, [#allocation3], %s882_s5, %s882_s5, %s883_s6  }
  0x2b   : > { %p758_p10 = pnand %p757_p3, %p751_p9 }
  0x2d   : > { %761 = shalt.err (!%p758_p10)
}
  0x2e   : > { %s1122_s10 = smov 256   ;;  %s1123_s11 = smov 16  }
  0x2f   : > { %s1134_s1 = sld [smem:[#allocation14_spill]]  ;;  %s84_s25 = sadd.s32 1, %s866_s14 }
  0x30   : > { %s30_s26 = sadd.s32 1, %s874_s16  ;;  %s178_s29 = sand.u32 1, %s878_s17  }
  0x31   : > { %p32_p6 = scmp.ge.s32.totalorder %s30_s26, 2  ;;  %s180_s4 = sand.u32 1, %s866_s14  }
  0x32   : > { %s618_s5 = sshll.u32 %s874_s16, 9  ;;  %s603_s6 = sshll.u32 %s180_s4, 5 }
  0x33   : > { %s1151_s26 = smov (%p32_p6, %s30_s26), 0  ;;  %s188_s8 = scalar_lea.hbm %s1117_s2, %s618_s5 }
  0x34   : > { %s81_s9 = ssub.s32 %s874_s16, %s1151_s26  ;;  %s182_s19 = scalar_lea.vmem [#allocation7], %s603_s6 }
  0x35   : > { %638 = dma.hbm_to_vmem [thread:$0]  (!%p982_p5), %s1134_s1, 8192, %s165_s30, [#allocation6], %s1122_s10, %s1122_s10, %s1123_s11  }
  0x36   : > { %p82_p8 = scmp.eq.s32.totalorder %s81_s9, 0  ;;  %s189_s20 = sshll.u32 %s182_s19, 4  ;;  %s190_s20 = int_to_ptr.vmem [resolvable:$true] %s189_s20 }
  0x37   : > { %s179_s10 = scalar_lea.sflag [#allocation3], %s178_s29  ;;  %p764_p0 = pneg %p988_p2 }
  0x38   : > { %s1026_s30 = scalar_select %p82_p8, %s866_s14, %s84_s25  }
  0x39   : > { %s775_s11 = scalar_lea.vmem %s190_s20, 512  ;;  %s886_s0 = smov [#allocation7]  }
  0x3a   : > { %p776_p5 = scmp.ne.s32.totalorder %s190_s20, %s775_s11  ;;  %s780_s4 = sshll.u32 %s886_s0, 4  ;;  %s781_s4 = int_to_ptr.vmem [resolvable:$false] %s780_s4 }
  0x3b   : > { %s782_s1 = scalar_lea.vmem %s781_s4, 1024  ;;  %p783_p4 = scmp.lt.s32.totalorder %s190_s20, %s781_s4 }
  0x3c   : > { %p778_p7 = pnand %p776_p5, %p764_p0  ;;  %p784_p1 = scmp.lt.s32.totalorder %s782_s1, %s775_s11 }
  0x3e   : > { %p779_p13 = pneg %p778_p7  ;;  %p785_p9 = por %p784_p1, %p783_p4 }
  0x40   : > { %p786_p11 = pnand %p785_p9, %p779_p13 }
  0x42   : > { %789 = shalt.err (!%p786_p11)
}
  0x43   : > { %s1135_s25 = smov 16   ;;  %s1136_s5 = smov 256  }
  0x44   : > { %642 = dma.hbm_to_vmem [thread:$0]  (!%p988_p2), %s188_s8, 512, %s190_s20, %s179_s10, %s1136_s5, %s1136_s5, %s1135_s25  }
  0x45   : > { %201 = sbr.rel (%p972_p12) target bundleno = 497 (0x1f1), region = 32  ;;  %p1137_p3 = scmp.eq.s32.totalorder (!%p972_p12), %s942_s18, 0 }
  0x4a   : > { %841 = dma.done.wait (%p1137_p3), [#allocation3], 256   ;;  %p1138_p10 = pmov %p1137_p3 }
  0x4b   : > { %p1139_p6 = pmov %p1137_p3 }
  0x4c   : > { %843 = vsyncadd (%p1138_p10), [#allocation3], 4294967040 }
  0x4d   : > { %845 = dma.done.wait (%p1139_p6), [#allocation6], 8192   ;;  %p1140_p8 = pmov %p1137_p3 }
  0x4e   : > { %s211_s0 = sand.u32 1, %s942_s18   ;;  %s213_s1 = sand.u32 1, %s862_s13  }
  0x4f   : > { %847 = vsyncadd (%p1140_p8), [#allocation6], 4294959104  ;;  %s1049_s24 = sshll.u32 %s213_s1, 5  ;;  %s212_s28 = scalar_lea.sflag [#allocation3], %s211_s0 }
  0x50   : > { %s215_s10 = scalar_lea.vmem [#allocation7], %s1049_s24  ;;  %p1141_p12 = scmp.ne.s32.totalorder %s1127_s21, 0 }
  0x52   : > { %849 = dma.done.wait (%p1141_p12), %s212_s28, 512  }
  0x53   : > { %851 = vsyncadd (%p1141_p12), %s212_s28, 4294966784  ;;  %v887_v0 = vmov 0.0   ;;  %v243_v1 = vld [vmem:[%s215_s10 + $0x18] sm:$0xff]  ;;  %v242_v2 = vld [vmem:[%s215_s10 + $0x10] sm:$0xff]  ;;  %vm246_vm0 = vcmask 130048   ;;  %s237_s18 = scalar_lea.vmem [#allocation8], %s1049_s24 }
  0x54   : > { %317 = vmatprep.mubr.f32.mxu0 %v887_v0  ;;  %v241_v3 = vld [vmem:[%s215_s10 + $0x8] sm:$0xff]  ;;  %281 = vmatprep.subr.mxu0 %v243_v1  ;;  %v240_v4 = vld [vmem:[%s215_s10] sm:$0xff]  ;;  %v244_v5 = vld [vmem:[#allocation2] sm:$0xff]  ;;  %s492_s21 = sshll.u32 %s237_s18, 4  ;;  %s619_s11 = sshll.u32 %s870_s15, 9  ;;  %s1060_s21 = int_to_ptr.vmem [resolvable:$true] %s492_s21 }
  0x55   : > { %282 = vmatpush1.msra.mxu0 %v242_v2  ;;  %v361_v6 = vld [vmem:[#allocation5 + $0xf8] sm:$0xff]  ;;  %v360_v7 = vld [vmem:[#allocation5 + $0xf0] sm:$0xff]  ;;  %v359_v8 = vld [vmem:[#allocation5 + $0xe8] sm:$0xff]  ;;  %s1065_s27 = scalar_lea.hbm %s1118_s3, %s619_s11  ;;  %s1069_s7 = scalar_lea.sflag [#allocation4], %s213_s1 }
  0x56   : > { %283 = vmatprep.subr.mxu0 %v241_v3  ;;  %394 = vmatprep.subr.mxu1 %v361_v6  ;;  %v358_v9 = vld [vmem:[#allocation5 + $0xe0] sm:$0xff]  ;;  %v357_v10 = vld [vmem:[#allocation5 + $0xd8] sm:$0xff]  ;;  %v356_v11 = vld [vmem:[#allocation5 + $0xd0] sm:$0xff]  ;;  %s790_s15 = scalar_lea.vmem %s1060_s21, 512  ;;  %p1142_p0 = scmp.ne.s32.totalorder %s1128_s22, 0 }
  0x57   : > { %284 = vmatpush1.msra.mxu0 %v240_v4  ;;  %395 = vmatpush1.msra.mxu1 %v360_v7  ;;  %v245_v12 = vld [vmem:[#allocation2 + $0x8] sm:$0xff]  ;;  %v355_v13 = vld [vmem:[#allocation5 + $0xc8] sm:$0xff]  ;;  %v354_v14 = vld [vmem:[#allocation5 + $0xc0] sm:$0xff]  ;;  %p791_p2 = scmp.ne.s32.totalorder %s1060_s21, %s790_s15  ;;  %s888_s8 = smov [#allocation8]  }
  0x58   : > { %611 = vmatmul.mubr.msk.f32.vlgmr.msra.gmra.mxu0 %vm246_vm0, %v244_v5  ;;  %396 = vmatprep.subr.mxu1 %v359_v8  ;;  %v353_v15 = vld [vmem:[#allocation5 + $0xb8] sm:$0xff]  ;;  %v352_v16 = vld [vmem:[#allocation5 + $0xb0] sm:$0xff]  ;;  %v351_v17 = vld [vmem:[#allocation5 + $0xa8] sm:$0xff]  ;;  %s794_s9 = sshll.u32 %s888_s8, 4  ;;  %s795_s9 = int_to_ptr.vmem [resolvable:$false] %s794_s9 }
  0x59   : > { %323 = vmatprep.mubr.f32.mxu0 %v887_v0  ;;  %397 = vmatpush1.msra.mxu1 %v358_v9  ;;  %v350_v18 = vld [vmem:[#allocation5 + $0xa0] sm:$0xff]  ;;  %v349_v19 = vld [vmem:[#allocation5 + $0x98] sm:$0xff]  ;;  %v348_v20 = vld [vmem:[#allocation5 + $0x90] sm:$0xff]  ;;  %p792_p5 = pnand %p791_p2, %p1142_p0  ;;  %s796_s19 = scalar_lea.vmem %s795_s9, 1024 }
  0x5a   : > { %398 = vmatprep.subr.mxu1 %v357_v10  ;;  %v347_v21 = vld [vmem:[#allocation5 + $0x88] sm:$0xff]  ;;  %v346_v22 = vld [vmem:[#allocation5 + $0x80] sm:$0xff]  ;;  %v345_v23 = vld [vmem:[#allocation5 + $0x78] sm:$0xff]  ;;  %p797_p13 = scmp.lt.s32.totalorder %s1060_s21, %s795_s9  ;;  %p798_p4 = scmp.lt.s32.totalorder %s796_s19, %s790_s15 }
  0x5b   : > { %399 = vmatpush1.msra.mxu1 %v356_v11  ;;  %v344_v24 = vld [vmem:[#allocation5 + $0x70] sm:$0xff]  ;;  %v343_v25 = vld [vmem:[#allocation5 + $0x68] sm:$0xff]  ;;  %v342_v26 = vld [vmem:[#allocation5 + $0x60] sm:$0xff]  ;;  %p793_p7 = pneg %p792_p5 }
  0x5c   : > { %612 = vmatmul.mubr.msk.f32.gmra.mxu0 %vm246_vm0, %v245_v12  ;;  %400 = vmatprep.subr.mxu1 %v355_v13  ;;  %v341_v27 = vld [vmem:[#allocation5 + $0x58] sm:$0xff]  ;;  %v340_v28 = vld [vmem:[#allocation5 + $0x50] sm:$0xff]  ;;  %v339_v29 = vld [vmem:[#allocation5 + $0x48] sm:$0xff]  ;;  %p799_p1 = por %p798_p4, %p797_p13 }
  0x5d   : > { %401 = vmatpush1.msra.mxu1 %v354_v14  ;;  %v338_v30 = vld [vmem:[#allocation5 + $0x40] sm:$0xff]  ;;  %v337_v31 = vld [vmem:[#allocation5 + $0x38] sm:$0xff]  ;;  %v336_v32 = vld [vmem:[#allocation5 + $0x30] sm:$0xff] }
  0x5e   : > { %402 = vmatprep.subr.mxu1 %v353_v15  ;;  %v335_v33 = vld [vmem:[#allocation5 + $0x28] sm:$0xff]  ;;  %v334_v34 = vld [vmem:[#allocation5 + $0x20] sm:$0xff]  ;;  %v333_v35 = vld [vmem:[#allocation5 + $0x18] sm:$0xff]  ;;  %p800_p9 = pnand %p799_p1, %p793_p7 }
  0x5f   : > { %403 = vmatpush1.msra.mxu1 %v352_v16  ;;  %v332_v36 = vld [vmem:[#allocation5 + $0x10] sm:$0xff]  ;;  %v331_v37 = vld [vmem:[#allocation5 + $0x8] sm:$0xff]  ;;  %v330_v38 = vld [vmem:[#allocation5] sm:$0xff] }
  0x60   : > { %404 = vmatprep.subr.mxu1 %v351_v17  ;;  %v393_v39 = vld [vmem:[#allocation5 + $0x1f8] sm:$0xff]  ;;  %v392_v40 = vld [vmem:[#allocation5 + $0x1f0] sm:$0xff]  ;;  %v391_v41 = vld [vmem:[#allocation5 + $0x1e8] sm:$0xff] }
  0x61   : > { %405 = vmatpush1.msra.mxu1 %v350_v18  ;;  %v390_v42 = vld [vmem:[#allocation5 + $0x1e0] sm:$0xff]  ;;  %v389_v43 = vld [vmem:[#allocation5 + $0x1d8] sm:$0xff]  ;;  %v388_v44 = vld [vmem:[#allocation5 + $0x1d0] sm:$0xff] }
  0x62   : > { %406 = vmatprep.subr.mxu1 %v349_v19  ;;  %v387_v45 = vld [vmem:[#allocation5 + $0x1c8] sm:$0xff]  ;;  %v386_v46 = vld [vmem:[#allocation5 + $0x1c0] sm:$0xff]  ;;  %v385_v47 = vld [vmem:[#allocation5 + $0x1b8] sm:$0xff] }
  0x63   : > { %407 = vmatpush1.msra.mxu1 %v348_v20  ;;  %v384_v48 = vld [vmem:[#allocation5 + $0x1b0] sm:$0xff]  ;;  %v383_v49 = vld [vmem:[#allocation5 + $0x1a8] sm:$0xff]  ;;  %v382_v50 = vld [vmem:[#allocation5 + $0x1a0] sm:$0xff] }
  0x64   : > { %408 = vmatprep.subr.mxu1 %v347_v21  ;;  %v381_v51 = vld [vmem:[#allocation5 + $0x198] sm:$0xff]  ;;  %v380_v52 = vld [vmem:[#allocation5 + $0x190] sm:$0xff]  ;;  %v379_v53 = vld [vmem:[#allocation5 + $0x188] sm:$0xff] }
  0x65   : > { %409 = vmatpush1.msra.mxu1 %v346_v22  ;;  %v378_v54 = vld [vmem:[#allocation5 + $0x180] sm:$0xff]  ;;  %v377_v55 = vld [vmem:[#allocation5 + $0x178] sm:$0xff]  ;;  %v376_v56 = vld [vmem:[#allocation5 + $0x170] sm:$0xff] }
  0x66   : > { %410 = vmatprep.subr.mxu1 %v345_v23  ;;  %v375_v57 = vld [vmem:[#allocation5 + $0x168] sm:$0xff]  ;;  %v374_v58 = vld [vmem:[#allocation5 + $0x160] sm:$0xff]  ;;  %v373_v59 = vld [vmem:[#allocation5 + $0x158] sm:$0xff] }
  0x67   : > { %411 = vmatpush1.msra.mxu1 %v344_v24  ;;  %v372_v60 = vld [vmem:[#allocation5 + $0x150] sm:$0xff]  ;;  %v371_v61 = vld [vmem:[#allocation5 + $0x148] sm:$0xff]  ;;  %v370_v62 = vld [vmem:[#allocation5 + $0x140] sm:$0xff] }
  0x68   : > { %412 = vmatprep.subr.mxu1 %v343_v25  ;;  %v369_v63 = vld [vmem:[#allocation5 + $0x138] sm:$0xff]  ;;  %v368_v0 = vld [vmem:[#allocation5 + $0x130] sm:$0xff]  ;;  %v367_v1 = vld [vmem:[#allocation5 + $0x128] sm:$0xff] }
  0x69   : > { %413 = vmatpush1.msra.mxu1 %v342_v26  ;;  %v366_v2 = vld [vmem:[#allocation5 + $0x120] sm:$0xff]  ;;  %v365_v3 = vld [vmem:[#allocation5 + $0x118] sm:$0xff]  ;;  %v364_v4 = vld [vmem:[#allocation5 + $0x110] sm:$0xff] }
  0x6a   : > { %414 = vmatprep.subr.mxu1 %v341_v27  ;;  %v363_v5 = vld [vmem:[#allocation5 + $0x108] sm:$0xff]  ;;  %v362_v6 = vld [vmem:[#allocation5 + $0x100] sm:$0xff] }
  0x6b   : > { %415 = vmatpush1.msra.mxu1 %v340_v28 }
  0x6c   : > { %416 = vmatprep.subr.mxu1 %v339_v29 }
  0x6d   : > { %417 = vmatpush1.msra.mxu1 %v338_v30 }
  0x6e   : > { %418 = vmatprep.subr.mxu1 %v337_v31 }
  0x6f   : > { %419 = vmatpush1.msra.mxu1 %v336_v32 }
  0x70   : > { %420 = vmatprep.subr.mxu1 %v335_v33 }
  0x71   : > { %421 = vmatpush1.msra.mxu1 %v334_v34 }
  0x72   : > { %422 = vmatprep.subr.mxu1 %v333_v35 }
  0x73   : > { %423 = vmatpush1.msra.mxu1 %v332_v36 }
  0x74   : > { %424 = vmatprep.subr.mxu1 %v331_v37 }
  0x75   : > { %425 = vmatpush1.msra.mxu1 %v330_v38 }
  0x76   : > { %426 = vmatprep.subr.mxu1 %v393_v39 }
  0x77   : > { %427 = vmatpush2.msra.mxu1 %v392_v40 }
  0x78   : > { %428 = vmatprep.subr.mxu1 %v391_v41 }
  0x79   : > { %429 = vmatpush2.msra.mxu1 %v390_v42 }
  0x7a   : > { %430 = vmatprep.subr.mxu1 %v389_v43 }
  0x7b   : > { %431 = vmatpush2.msra.mxu1 %v388_v44 }
  0x7c   : > { %432 = vmatprep.subr.mxu1 %v387_v45 }
  0x7d   : > { %433 = vmatpush2.msra.mxu1 %v386_v46 }
  0x7e   : > { %434 = vmatprep.subr.mxu1 %v385_v47 }
  0x7f   : > { %435 = vmatpush2.msra.mxu1 %v384_v48 }
  0x80   : > { %436 = vmatprep.subr.mxu1 %v383_v49 }
  0x81   : > { %437 = vmatpush2.msra.mxu1 %v382_v50 }
  0x82   : > { %438 = vmatprep.subr.mxu1 %v381_v51 }
  0x83   : > { %439 = vmatpush2.msra.mxu1 %v380_v52 }
  0x84   : > { %440 = vmatprep.subr.mxu1 %v379_v53 }
  0x85   : > { %441 = vmatpush2.msra.mxu1 %v378_v54 }
  0x86   : > { %442 = vmatprep.subr.mxu1 %v377_v55 }
  0x87   : > { %443 = vmatpush2.msra.mxu1 %v376_v56 }
  0x88   : > { %444 = vmatprep.subr.mxu1 %v375_v57 }
  0x89   : > { %445 = vmatpush2.msra.mxu1 %v374_v58 }
  0x8a   : > { %446 = vmatprep.subr.mxu1 %v373_v59 }
  0x8b   : > { %447 = vmatpush2.msra.mxu1 %v372_v60 }
  0x8c   : > { %448 = vmatprep.subr.mxu1 %v371_v61 }
  0x8d   : > { %449 = vmatpush2.msra.mxu1 %v370_v62 }
  0x8e   : > { %450 = vmatprep.subr.mxu1 %v369_v63 }
  0x8f   : > { %451 = vmatpush2.msra.mxu1 %v368_v0 }
  0x90   : > { %452 = vmatprep.subr.mxu1 %v367_v1 }
  0x91   : > { %453 = vmatpush2.msra.mxu1 %v366_v2 }
  0x92   : > { %454 = vmatprep.subr.mxu1 %v365_v3 }
  0x93   : > { %455 = vmatpush2.msra.mxu1 %v364_v4 }
  0x94   : > { %456 = vmatprep.subr.mxu1 %v363_v5 }
  0x95   : > { %457 = vmatpush2.msra.mxu1 %v362_v6 }
 0x118   : > { %v319_v7 = vpop.f32.mrf.mxu0 }
 0x11a   : > { %v321_v8 = vpop.f32.mrf.mxu0 }
 0x11b   : > { %458 = vmatprep.mubr.f32.mxu1 %v321_v8 }
 0x11c   : > { %v325_v9 = vpop.f32.mrf.mxu0  ;;  %459 = vmatmul.mubr.f32.vlgmr.msra.gmra.mxu1 %v319_v7 }
 0x11e   : > { %v327_v10 = vpop.f32.mrf.mxu0 }
 0x11f   : > { %464 = vmatprep.mubr.f32.mxu1 %v327_v10 }
 0x120   : > { %465 = vmatmul.mubr.f32.gmra.mxu1 %v325_v9 }
 0x1dc   : > { %v460_v11 = vpop.f32.mrf.mxu1 }
 0x1dd   : > { %471 = vst [vmem:[%s237_s18] sm:$0xff] %v460_v11 }
 0x1de   : > { %v462_v12 = vpop.f32.mrf.mxu1 }
 0x1df   : > { %472 = vst [vmem:[%s237_s18 + $0x8] sm:$0xff] %v462_v12 }
 0x1e0   : > { %v466_v13 = vpop.f32.mrf.mxu1 }
 0x1e1   : > { %473 = vst [vmem:[%s237_s18 + $0x10] sm:$0xff] %v466_v13 }
 0x1e2   : > { %v468_v14 = vpop.f32.mrf.mxu1 }
 0x1e3   : > { %474 = vst [vmem:[%s237_s18 + $0x18] sm:$0xff] %v468_v14 }
 0x1e4   : > { %803 = shalt.err (!%p800_p9)
}
 0x1e5   : > { %s804_s20 = scalar_lea.hbm %s1065_s27, 512  ;;  %s808_s5 = scalar_lea.hbm %s1118_s3, 1024 }
 0x1e6   : > { %p805_p11 = scmp.ne.s32.totalorder %s1065_s27, %s804_s20  ;;  %p809_p6 = scmp.lt.s32.totalorder %s1065_s27, %s1118_s3 }
 0x1e7   : > { %p810_p8 = scmp.lt.s32.totalorder %s808_s5, %s804_s20 }
 0x1e8   : > { %p806_p3 = pnand %p805_p11, %p1142_p0 }
 0x1e9   : > { %p811_p12 = por %p810_p8, %p809_p6 }
 0x1ea   : > { %p807_p10 = pneg %p806_p3 }
 0x1ec   : > { %p812_p2 = pnand %p811_p12, %p807_p10 }
 0x1ee   : > { %815 = shalt.err (!%p812_p2)
}
 0x1ef   : > { %s889_s24 = smov 256   ;;  %s890_s28 = smov 16  }
 0x1f0   : > { %630 = dma.vmem_to_hbm [thread:$0]  (%p1142_p0), %s1060_s21, 512, %s1065_s27, %s1069_s7, %s889_s24, %s889_s24, %s890_s28  }
 0x1f1 PF: > { %s507_s10 = sand.u32 1, %s858_s12   ;;  %p1143_p5 = scmp.ne.s32.totalorder %s1129_s23, 0 }
 0x1f2   : > { %p1144_p7 = scmp.ge.s32.totalorder %s878_s17, 2  ;;  %s508_s18 = scalar_lea.sflag [#allocation4], %s507_s10 }
 0x1f4   : > { %p644_p13 = pnand %p1144_p7, %p1143_p5 }
 0x1f6   : > { %p645_p4 = pneg %p644_p13 }
 0x1f8   : > { %853 = dma.done.wait (%p645_p4), %s508_s18, 512  }
 0x1f9   : > { %855 = vsyncadd (%p645_p4), %s508_s18, 4294966784  ;;  %s18_s17 = sadd.s32 1, %s878_s17   ;;  %s1145_s12 = smov %s862_s13 }
 0x1fa   : > { %p15_p1 = scmp.ge.s32.totalorder %s18_s17, 4   ;;  %s1146_s13 = smov %s866_s14 }
 0x1fb   : > { %s1147_s14 = smov %s1026_s30  ;;  %s1148_s15 = smov %s874_s16 }
 0x1fc   : > { %s1149_s16 = smov %s1151_s26  ;;  %17 = sbr.rel (!%p15_p1) target bundleno = 9 (0x9), region = 85 }
 0x201   :  { %513 = vsyncpa [#allocation3], 1 }
 0x202   :  { %515 = vsyncpa [#allocation3 + $0x1], 1 }
 0x203   :  { %516 = vsyncpa [#allocation6], 1 }
 0x204   :  { %517 = vsyncpa [#allocation4], 1 }
 0x205   :  { %519 = vsyncpa [#allocation4 + $0x1], 1 }

</bundles_post_ra>
